<compile_context>
chip_gen: v6e
topology: v6e:2x2x1
jax: 0.10.0
libtpu: 0.0.40
codegen_flags: <defaults>
</compile_context>

<pallas_src>
import jax
import jax.numpy as jnp
from jax.experimental import pallas as pl
from jax.experimental.pallas import tpu as pltpu

# ---- deterministic GP hyperparameters (synthetic, "trained" values) --------
LENGTHSCALE = 1.5
OUTPUTSCALE = 2.0
NOISE = 0.1
MEAN_CONST = 0.25


def _round_up(x, m):
    return ((x + m - 1) // m) * m


def _vmem_capacity_bytes():
    """Physical per-core VMEM; conservative (v7x) fallback if unqueryable."""
    try:
        return int(pltpu.get_tpu_info().vmem_capacity_bytes)
    except Exception:
        return 64 * 1024 * 1024


def _gp_mean_var_kernel(xs_ref, xtT_ref, xtsq_ref, alpha_ref, kinv_ref,
                        out_ref, kstar_scr, quad_scr, mean_scr):
    """One (M-tile, kinv-row-block) grid step of the GP posterior."""
    k = pl.program_id(1)
    nk = pl.num_programs(1)
    tn = kinv_ref.shape[0]

    # --- first reduction step for this M-tile: build K(x*, X) once ----------
    @pl.when(k == 0)
    def _():
        xs = xs_ref[...]                                        # (TM, D)
        xs_sq = jnp.sum(xs * xs, axis=-1, keepdims=True)        # (TM, 1)
        # Clean MXU (TM,D)@(D,Np) matmul: x_train is pre-transposed outside,
        # no in-kernel relayout through the XLU.
        cross = jnp.dot(xs, xtT_ref[...],
                        preferred_element_type=jnp.float32)     # (TM, Np)
        sqdist = jnp.maximum(xs_sq + xtsq_ref[...] - 2.0 * cross, 0.0)
        kstar_scr[...] = OUTPUTSCALE * jnp.exp(
            -0.5 * sqdist / (LENGTHSCALE * LENGTHSCALE))
        quad_scr[...] = jnp.zeros_like(quad_scr)
        mean_scr[...] = jnp.zeros_like(mean_scr)

    # --- accumulate quad + mean over this contiguous kinv row block ---------
    # quad  += sum_c (kstar[:, blk] @ kinv[blk, :])_c * kstar_c
    # mean  += sum_j  kstar[:, blk]_j * alpha[blk]_j
    # (f32 matmul: the OUTPUTSCALE - quad cancellation is numerics-fragile;
    #  bf16 kinv only after switching to the Cholesky-factor form.)
    col0 = pl.multiple_of(k * tn, tn)                           # lane-aligned
    ks_blk = kstar_scr[:, pl.ds(col0, tn)]                      # (TM, TN)
    tmp = jnp.dot(ks_blk, kinv_ref[...],
                  preferred_element_type=jnp.float32)           # (TM, Np)
    quad_scr[...] += jnp.sum(tmp * kstar_scr[...], axis=-1, keepdims=True)
    mean_scr[...] += jnp.sum(ks_blk * alpha_ref[...], axis=-1, keepdims=True)

    # --- finalize: lane-dense (2, TM) store ----------------------------------
    @pl.when(k == nk - 1)
    def _():
        mean_col = mean_scr[...] + MEAN_CONST                         # (TM, 1)
        var_col = jnp.maximum(OUTPUTSCALE - quad_scr[...], 1e-10)     # (TM, 1)
        out_ref[...] = jnp.concatenate(
            [mean_col.T, var_col.T], axis=0).astype(out_ref.dtype)    # (2, TM)


def gp_mean_var(x_test_p, x_train_T_p, xt_sq_p, alpha_row_p, kinv_p,
                *, tm, tn, vmem_limit_bytes):
    """Pallas wrapper on padded inputs. Returns a (2, Mp) slab (mean; var)."""
    mp, d = x_test_p.shape
    n_p = kinv_p.shape[0]
    grid = (mp // tm, n_p // tn)

    return pl.pallas_call(
        _gp_mean_var_kernel,
        out_shape=jax.ShapeDtypeStruct((2, mp), jnp.float32),
        grid_spec=pltpu.PrefetchScalarGridSpec(
            num_scalar_prefetch=0,
            grid=grid,
            in_specs=[
                # per-M-tile test points (pipelined over i); feature dim is
                # full-extent (no 128-lane padding).
                pl.BlockSpec((tm, d), lambda i, k: (i, 0)),
                # resident constants (block index never changes)
                pl.BlockSpec((d, n_p), lambda i, k: (0, 0)),     # x_train^T
                pl.BlockSpec((1, n_p), lambda i, k: (0, 0)),     # |x_train|^2
                # alpha streamed per reduction block (tiny)
                pl.BlockSpec((1, tn), lambda i, k: (0, k)),
                # kinv streamed as contiguous ROW blocks over the reduction
                # axis (symmetric, so row/col blocking is equivalent).
                # On v5e, if DMA is still exposed, add
                # pipeline_mode=pl.Buffered(3) here.
                pl.BlockSpec((tn, n_p), lambda i, k: (k, 0)),
            ],
            out_specs=pl.BlockSpec((2, tm), lambda i, k: (0, i)),
            scratch_shapes=[
                pltpu.VMEM((tm, n_p), jnp.float32),   # k_star tile
                pltpu.VMEM((tm, 1), jnp.float32),     # quad accumulator
                pltpu.VMEM((tm, 1), jnp.float32),     # mean accumulator
            ],
        ),
        compiler_params=pltpu.CompilerParams(
            dimension_semantics=("parallel", "arbitrary"),
            vmem_limit_bytes=vmem_limit_bytes,
        ),
    )(x_test_p, x_train_T_p, xt_sq_p, alpha_row_p, kinv_p)


class MeanVarModelWrapperPallas:
    """JAX/Pallas analogue of MeanVarModelWrapper: __call__(x) -> (mean, var)."""

    def __init__(self, x_train, y_train):
        x_train = jnp.asarray(x_train, jnp.float32)
        y_train = jnp.asarray(y_train, jnp.float32)
        n, d = x_train.shape

        # --- one-time conditioning (plain JAX glue), via Cholesky solve -----
        diff = x_train[:, None, :] - x_train[None, :, :]
        sqd = jnp.sum(diff * diff, axis=-1)
        k_train = OUTPUTSCALE * jnp.exp(-0.5 * sqd / (LENGTHSCALE * LENGTHSCALE))
        k_noisy = k_train + NOISE * jnp.eye(n, dtype=jnp.float32)
        cho = jax.scipy.linalg.cho_factor(k_noisy, lower=True)
        self.kinv = jax.scipy.linalg.cho_solve(
            cho, jnp.eye(n, dtype=jnp.float32)).astype(jnp.float32)
        self.alpha = jax.scipy.linalg.cho_solve(
            cho, (y_train - MEAN_CONST)[:, None]).astype(jnp.float32)   # (N, 1)
        self.x_train = x_train
        self._d = d

        # --- generation-aware tiling / VMEM budget ---------------------------
        vmem_cap = _vmem_capacity_bytes()
        # 7/8 of physical leaves headroom for compiler-internal scratch;
        # ~100 MiB on v5e/v6e (128 MiB parts), ~56 MiB on v7x (64 MiB part).
        self._vmem_limit = min(int(vmem_cap * 7 // 8), 100 * 1024 * 1024)

        n_p0 = _round_up(n, 128)
        kinv_buf_budget = vmem_cap // 8          # per (double-buffered) buffer
        tn = min(n_p0, 1024)
        while tn > 128 and tn * n_p0 * 4 > kinv_buf_budget:
            tn -= 128
        n_p = _round_up(n, tn)                   # multiple of tn (and of 128)
        self._np = n_p
        self._tn = tn

        # --- padded, kernel-friendly copies (zero padding is exact: padded
        #     alpha / kinv entries are exactly 0, so padded train columns
        #     contribute nothing) -------------------------------------------
        self._x_train_T_p = jnp.zeros((d, n_p), jnp.float32).at[:, :n].set(
            x_train.T)
        xt_sq = jnp.sum(x_train * x_train, axis=-1)
        self._xt_sq_p = jnp.zeros((1, n_p), jnp.float32).at[0, :n].set(xt_sq)
        self._alpha_row_p = jnp.zeros((1, n_p), jnp.float32).at[0, :n].set(
            self.alpha[:, 0])
        self._kinv_p = jnp.zeros((n_p, n_p), jnp.float32).at[:n, :n].set(self.kinv)

    def __call__(self, x):
        x = jnp.asarray(x, jnp.float32)
        m, d = x.shape
        # TM: 256-row tiles (>= 2 "parallel" tiles whenever m > tm, so the
        # v7x megacore engages); small M collapses to one full-extent tile
        # rounded to the sublane multiple of 8.  For very small M on v7x a
        # CORE_PARALLEL split of the reduction would be needed to use both
        # TensorCores, but the problem is tiny there anyway.
        tm = min(256, _round_up(m, 8))
        mp = _round_up(m, tm)
        x_p = jnp.zeros((mp, d), jnp.float32).at[:m, :].set(x)

        out = gp_mean_var(x_p, self._x_train_T_p, self._xt_sq_p,
                          self._alpha_row_p, self._kinv_p,
                          tm=tm, tn=self._tn,
                          vmem_limit_bytes=self._vmem_limit)
        return out[0, :m], out[1, :m]


def _reference(x_test, x_train, alpha, kinv):
    """Pure-JAX reference for a sanity check."""
    diff = x_test[:, None, :] - x_train[None, :, :]
    sqd = jnp.sum(diff * diff, axis=-1)
    k_star = OUTPUTSCALE * jnp.exp(-0.5 * sqd / (LENGTHSCALE * LENGTHSCALE))
    mean = k_star @ alpha[:, 0] + MEAN_CONST
    var = jnp.maximum(OUTPUTSCALE - jnp.sum((k_star @ kinv) * k_star, axis=-1), 1e-10)
    return mean, var


if __name__ == "__main__":
    key = jax.random.PRNGKey(0)
    k1, k2, k3 = jax.random.split(key, 3)

    N_TRAIN, M_TEST, D = 32, 8, 16
    x_train = jax.random.normal(k1, (N_TRAIN, D), dtype=jnp.float32)
    y_train = jnp.sin(jnp.sum(x_train, axis=-1)) + 0.05 * jax.random.normal(
        k2, (N_TRAIN,), dtype=jnp.float32
    )
    x_test = jax.random.normal(k3, (M_TEST, D), dtype=jnp.float32)

    model = MeanVarModelWrapperPallas(x_train, y_train)
    mean, var = model(x_test)
    mean = jax.block_until_ready(mean)
    var = jax.block_until_ready(var)

    ref_mean, ref_var = _reference(x_test, x_train, model.alpha, model.kinv)
    assert jnp.allclose(mean, ref_mean, atol=1e-4, rtol=1e-4), (mean, ref_mean)
    assert jnp.allclose(var, ref_var, atol=1e-4, rtol=1e-4), (var, ref_var)
    assert bool(jnp.all(var > 0.0))

    print("KERNEL_OK")
</pallas_src>

<mosaic_0001>
module attributes {stable_mosaic.version = 11 : i64} {
  func.func @_gp_mean_var_kernel(%arg0: i32, %arg1: i32, %arg2: memref<8x16xf32, #tpu.memory_space<vmem>>, %arg3: memref<16x128xf32, #tpu.memory_space<vmem>>, %arg4: memref<1x128xf32, #tpu.memory_space<vmem>>, %arg5: memref<1x128xf32, #tpu.memory_space<vmem>>, %arg6: memref<128x128xf32, #tpu.memory_space<vmem>>, %arg7: memref<2x8xf32, #tpu.memory_space<vmem>>, %arg8: memref<8x128xf32, #tpu.memory_space<vmem>>, %arg9: memref<8x1xf32, #tpu.memory_space<vmem>>, %arg10: memref<8x1xf32, #tpu.memory_space<vmem>>) attributes {dimension_semantics = [#tpu.dimension_semantics<parallel>, #tpu.dimension_semantics<arbitrary>], iteration_bounds = array<i64: 1, 1>, scalar_prefetch = 0 : i64, scratch_operands = 3 : i64, tpu.core_type = #tpu.core_type<tc>, window_params = [{transform_indices = @transform_0, window_bounds = array<i64: 8, 16>}, {pipeline_mode = #tpu.pipeline_mode<synchronous>, transform_indices = @transform_1, window_bounds = array<i64: 16, 128>}, {pipeline_mode = #tpu.pipeline_mode<synchronous>, transform_indices = @transform_2, window_bounds = array<i64: 1, 128>}, {transform_indices = @transform_3, window_bounds = array<i64: 1, 128>}, {transform_indices = @transform_4, window_bounds = array<i64: 128, 128>}, {transform_indices = @transform_5, window_bounds = array<i64: 2, 8>}]} {
    %c0_i32 = arith.constant 0 : i32
    %0 = arith.cmpi eq, %arg1, %c0_i32 : i32
    %1 = arith.extui %0 : i1 to i32
    %c0_i32_0 = arith.constant 0 : i32
    %2 = arith.cmpi ne, %1, %c0_i32_0 : i32
    scf.if %2 {
      %c0_19 = arith.constant 0 : index
      %c0_20 = arith.constant 0 : index
      %27 = vector.load %arg2[%c0_19, %c0_20] : memref<8x16xf32, #tpu.memory_space<vmem>>, vector<8x16xf32>
      %28 = arith.mulf %27, %27 : vector<8x16xf32>
      %cst_21 = arith.constant dense<0.000000e+00> : vector<8xf32>
      %29 = vector.multi_reduction <add>, %28, %cst_21 [1] : vector<8x16xf32> to vector<8xf32>
      %30 = vector.shape_cast %29 : vector<8xf32> to vector<8x1xf32>
      %c0_22 = arith.constant 0 : index
      %c0_23 = arith.constant 0 : index
      %31 = vector.load %arg3[%c0_22, %c0_23] : memref<16x128xf32, #tpu.memory_space<vmem>>, vector<16x128xf32>
      %cst_24 = arith.constant dense<0.000000e+00> : vector<8x128xf32>
      %32 = tpu.matmul %27, %31, %cst_24 {dimension_numbers = #tpu.dot_dimension_numbers<[1], [0], [0], [1], [0, 0, 1, 1], [], []>} : vector<8x16xf32>, vector<16x128xf32>, vector<8x128xf32> -> vector<8x128xf32>
      %c0_25 = arith.constant 0 : index
      %c0_26 = arith.constant 0 : index
      %33 = vector.load %arg4[%c0_25, %c0_26] : memref<1x128xf32, #tpu.memory_space<vmem>>, vector<1x128xf32>
      %34 = vector.broadcast %30 : vector<8x1xf32> to vector<8x128xf32>
      %35 = vector.broadcast %33 : vector<1x128xf32> to vector<8x128xf32>
      %36 = arith.addf %34, %35 : vector<8x128xf32>
      %cst_27 = arith.constant 2.000000e+00 : f32
      %37 = vector.broadcast %cst_27 : f32 to vector<8x128xf32>
      %38 = arith.mulf %37, %32 : vector<8x128xf32>
      %39 = arith.subf %36, %38 : vector<8x128xf32>
      %cst_28 = arith.constant 0.000000e+00 : f32
      %40 = vector.broadcast %cst_28 : f32 to vector<8x128xf32>
      %41 = arith.maximumf %39, %40 : vector<8x128xf32>
      %cst_29 = arith.constant -5.000000e-01 : f32
      %42 = vector.broadcast %cst_29 : f32 to vector<8x128xf32>
      %43 = arith.mulf %42, %41 : vector<8x128xf32>
      %cst_30 = arith.constant 2.250000e+00 : f32
      %44 = vector.broadcast %cst_30 : f32 to vector<8x128xf32>
      %45 = arith.divf %43, %44 : vector<8x128xf32>
      %46 = math.exp %45 : vector<8x128xf32>
      %cst_31 = arith.constant 2.000000e+00 : f32
      %47 = vector.broadcast %cst_31 : f32 to vector<8x128xf32>
      %48 = arith.mulf %47, %46 : vector<8x128xf32>
      %c0_32 = arith.constant 0 : index
      %c0_33 = arith.constant 0 : index
      %49 = vector.load %arg8[%c0_32, %c0_33] : memref<8x128xf32, #tpu.memory_space<vmem>>, vector<8x128xf32>
      tpu.vector_store %arg8[%c0_32, %c0_33], %48 {strides = array<i32>} : memref<8x128xf32, #tpu.memory_space<vmem>>, vector<8x128xf32>,
      %cst_34 = arith.constant 0.000000e+00 : f32
      %50 = vector.broadcast %cst_34 : f32 to vector<8x1xf32>
      %c0_35 = arith.constant 0 : index
      %c0_36 = arith.constant 0 : index
      %51 = vector.load %arg9[%c0_35, %c0_36] : memref<8x1xf32, #tpu.memory_space<vmem>>, vector<8x1xf32>
      tpu.vector_store %arg9[%c0_35, %c0_36], %50 {strides = array<i32>} : memref<8x1xf32, #tpu.memory_space<vmem>>, vector<8x1xf32>,
      %cst_37 = arith.constant 0.000000e+00 : f32
      %52 = vector.broadcast %cst_37 : f32 to vector<8x1xf32>
      %c0_38 = arith.constant 0 : index
      %c0_39 = arith.constant 0 : index
      %53 = vector.load %arg10[%c0_38, %c0_39] : memref<8x1xf32, #tpu.memory_space<vmem>>, vector<8x1xf32>
      tpu.vector_store %arg10[%c0_38, %c0_39], %52 {strides = array<i32>} : memref<8x1xf32, #tpu.memory_space<vmem>>, vector<8x1xf32>,
    } else {
    }
    %c128_i32 = arith.constant 128 : i32
    %3 = arith.muli %arg1, %c128_i32 : i32
    %4 = tpu.assume_multiple %3, 128 : i32
    %c0 = arith.constant 0 : index
    %5 = arith.index_cast %4 : i32 to index
    %6 = vector.load %arg8[%c0, %5] : memref<8x128xf32, #tpu.memory_space<vmem>>, vector<8x128xf32>
    %c0_1 = arith.constant 0 : index
    %c0_2 = arith.constant 0 : index
    %7 = vector.load %arg6[%c0_1, %c0_2] : memref<128x128xf32, #tpu.memory_space<vmem>>, vector<128x128xf32>
    %cst = arith.constant dense<0.000000e+00> : vector<8x128xf32>
    %8 = tpu.matmul %6, %7, %cst {dimension_numbers = #tpu.dot_dimension_numbers<[1], [0], [0], [1], [0, 0, 1, 1], [], []>} : vector<8x128xf32>, vector<128x128xf32>, vector<8x128xf32> -> vector<8x128xf32>
    %c0_3 = arith.constant 0 : index
    %c0_4 = arith.constant 0 : index
    %9 = vector.load %arg9[%c0_3, %c0_4] : memref<8x1xf32, #tpu.memory_space<vmem>>, vector<8x1xf32>
    %c0_5 = arith.constant 0 : index
    %c0_6 = arith.constant 0 : index
    %10 = vector.load %arg8[%c0_5, %c0_6] : memref<8x128xf32, #tpu.memory_space<vmem>>, vector<8x128xf32>
    %11 = arith.mulf %8, %10 : vector<8x128xf32>
    %cst_7 = arith.constant dense<0.000000e+00> : vector<8xf32>
    %12 = vector.multi_reduction <add>, %11, %cst_7 [1] : vector<8x128xf32> to vector<8xf32>
    %13 = vector.shape_cast %12 : vector<8xf32> to vector<8x1xf32>
    %14 = arith.addf %9, %13 : vector<8x1xf32>
    %c0_8 = arith.constant 0 : index
    %c0_9 = arith.constant 0 : index
    %15 = vector.load %arg9[%c0_8, %c0_9] : memref<8x1xf32, #tpu.memory_space<vmem>>, vector<8x1xf32>
    tpu.vector_store %arg9[%c0_8, %c0_9], %14 {strides = array<i32>} : memref<8x1xf32, #tpu.memory_space<vmem>>, vector<8x1xf32>,
    %c0_10 = arith.constant 0 : index
    %c0_11 = arith.constant 0 : index
    %16 = vector.load %arg10[%c0_10, %c0_11] : memref<8x1xf32, #tpu.memory_space<vmem>>, vector<8x1xf32>
    %c0_12 = arith.constant 0 : index
    %c0_13 = arith.constant 0 : index
    %17 = vector.load %arg5[%c0_12, %c0_13] : memref<1x128xf32, #tpu.memory_space<vmem>>, vector<1x128xf32>
    %18 = vector.broadcast %17 : vector<1x128xf32> to vector<8x128xf32>
    %19 = arith.mulf %6, %18 : vector<8x128xf32>
    %cst_14 = arith.constant dense<0.000000e+00> : vector<8xf32>
    %20 = vector.multi_reduction <add>, %19, %cst_14 [1] : vector<8x128xf32> to vector<8xf32>
    %21 = vector.shape_cast %20 : vector<8xf32> to vector<8x1xf32>
    %22 = arith.addf %16, %21 : vector<8x1xf32>
    %c0_15 = arith.constant 0 : index
    %c0_16 = arith.constant 0 : index
    %23 = vector.load %arg10[%c0_15, %c0_16] : memref<8x1xf32, #tpu.memory_space<vmem>>, vector<8x1xf32>
    tpu.vector_store %arg10[%c0_15, %c0_16], %22 {strides = array<i32>} : memref<8x1xf32, #tpu.memory_space<vmem>>, vector<8x1xf32>,
    %c0_i32_17 = arith.constant 0 : i32
    %24 = arith.cmpi eq, %arg1, %c0_i32_17 : i32
    %25 = arith.extui %24 : i1 to i32
    %c0_i32_18 = arith.constant 0 : i32
    %26 = arith.cmpi ne, %25, %c0_i32_18 : i32
    scf.if %26 {
      %c0_19 = arith.constant 0 : index
      %c0_20 = arith.constant 0 : index
      %27 = vector.load %arg10[%c0_19, %c0_20] : memref<8x1xf32, #tpu.memory_space<vmem>>, vector<8x1xf32>
      %cst_21 = arith.constant 2.500000e-01 : f32
      %28 = vector.broadcast %cst_21 : f32 to vector<8x1xf32>
      %29 = arith.addf %27, %28 : vector<8x1xf32>
      %c0_22 = arith.constant 0 : index
      %c0_23 = arith.constant 0 : index
      %30 = vector.load %arg9[%c0_22, %c0_23] : memref<8x1xf32, #tpu.memory_space<vmem>>, vector<8x1xf32>
      %cst_24 = arith.constant 2.000000e+00 : f32
      %31 = vector.broadcast %cst_24 : f32 to vector<8x1xf32>
      %32 = arith.subf %31, %30 : vector<8x1xf32>
      %cst_25 = arith.constant 1.000000e-10 : f32
      %33 = vector.broadcast %cst_25 : f32 to vector<8x1xf32>
      %34 = arith.maximumf %32, %33 : vector<8x1xf32>
      %35 = tpu.transpose %29, [1, 0] : vector<8x1xf32> -> vector<1x8xf32>
      %36 = tpu.transpose %34, [1, 0] : vector<8x1xf32> -> vector<1x8xf32>
      %37 = tpu.concatenate %35, %36 in 0 : vector<1x8xf32>, vector<1x8xf32> -> vector<2x8xf32>
      %c0_26 = arith.constant 0 : index
      %c0_27 = arith.constant 0 : index
      %38 = vector.load %arg7[%c0_26, %c0_27] : memref<2x8xf32, #tpu.memory_space<vmem>>, vector<2x8xf32>
      tpu.vector_store %arg7[%c0_26, %c0_27], %37 {strides = array<i32>} : memref<2x8xf32, #tpu.memory_space<vmem>>, vector<2x8xf32>,
    } else {
    }
    return
  }
  func.func @transform_0(%arg0: i32, %arg1: i32) -> (i32, i32) {
    %c0_i32 = arith.constant 0 : i32
    %c0_i32_0 = arith.constant 0 : i32
    return %arg0, %c0_i32 : i32, i32
  }
  func.func @transform_1(%arg0: i32, %arg1: i32) -> (i32, i32) {
    %c0_i32 = arith.constant 0 : i32
    %c0_i32_0 = arith.constant 0 : i32
    %c0_i32_1 = arith.constant 0 : i32
    return %c0_i32, %c0_i32_0 : i32, i32
  }
  func.func @transform_2(%arg0: i32, %arg1: i32) -> (i32, i32) {
    %c0_i32 = arith.constant 0 : i32
    %c0_i32_0 = arith.constant 0 : i32
    %c0_i32_1 = arith.constant 0 : i32
    return %c0_i32, %c0_i32_0 : i32, i32
  }
  func.func @transform_3(%arg0: i32, %arg1: i32) -> (i32, i32) {
    %c0_i32 = arith.constant 0 : i32
    %c0_i32_0 = arith.constant 0 : i32
    return %c0_i32, %arg1 : i32, i32
  }
  func.func @transform_4(%arg0: i32, %arg1: i32) -> (i32, i32) {
    %c0_i32 = arith.constant 0 : i32
    %c0_i32_0 = arith.constant 0 : i32
    return %arg1, %c0_i32 : i32, i32
  }
  func.func @transform_5(%arg0: i32, %arg1: i32) -> (i32, i32) {
    %c0_i32 = arith.constant 0 : i32
    %c0_i32_0 = arith.constant 0 : i32
    return %c0_i32, %arg0 : i32, i32
  }
}

</mosaic_0001>

<bundles_post_ra>
// kernel: tpu_custom_call.1
= control target key start
LH: loop header
LB: loop body
LE: loop exit
PB: predicated region body
PF: predicated region fallthrough
CT: control target
= control target key end

     0   :  { %10 = vsyncpa [#allocation6], 0  ;;  %s617_s0 = inlined_call_operand.hbm [shape: f32[8,16], index: 0, kind: input, shape index: {}]   ;;  %s618_s1 = inlined_call_operand.hbm [shape: f32[16,128], index: 1, kind: input, shape index: {}]   ;;  %s619_s2 = inlined_call_operand.vmem [shape: f32[1,128], index: 2, kind: input, shape index: {}]   ;;  %s620_s3 = inlined_call_operand.vmem [shape: f32[1,128], index: 3, kind: input, shape index: {}]   ;;  %s621_s4 = inlined_call_operand.hbm [shape: f32[128,128], index: 4, kind: input, shape index: {}]   ;;  %s622_s5 = inlined_call_operand.hbm [shape: f32[2,8], index: 5, kind: output, shape index: {}]  }
   0x1   :  { %11 = vsyncpa [#allocation9], 0 }
   0x2   :  { %12 = vsyncpa [#allocation7], 0  ;;  %s535_s18 = smov [#allocation8]  }
   0x3   :  { %s28_s19 = sshll.u32 %s535_s18, 4  ;;  %s29_s19 = int_to_ptr.vmem [resolvable:$true] %s28_s19 }
   0x4   :  { %s457_s20 = scalar_lea.vmem %s29_s19, 256  ;;  %p462_p1 = scmp.lt.s32.totalorder %s29_s19, %s29_s19 }
   0x5   :  { %p458_p0 = scmp.ne.s32.totalorder %s29_s19, %s457_s20  ;;  %p463_p2 = scmp.lt.s32.totalorder %s457_s20, %s457_s20 }
   0x7   :  { %p464_p3 = por %p463_p2, %p462_p1 }
   0x9   :  { %p465_p4 = pnand %p464_p3, %p458_p0 }
   0xb   :  { %468 = shalt.err (!%p465_p4)
}
   0xc   :  { %s536_s21 = smov 128   ;;  %s537_s22 = smov 8  }
   0xd   :  { %34 = dma.hbm_to_vmem [thread:$0]  %s618_s1, 256, %s29_s19, [#allocation9], %s536_s21, %s536_s21, %s537_s22  }
   0xe   :  { %s538_s25 = smov [#allocation5]   ;;  %s539_s27 = smov [#allocation10]  }
   0xf   :  { %s19_s26 = sshll.u32 %s538_s25, 4  ;;  %s44_s28 = sshll.u32 %s539_s27, 4  ;;  %s20_s26 = int_to_ptr.vmem [resolvable:$true] %s19_s26  ;;  %s45_s28 = int_to_ptr.vmem [resolvable:$true] %s44_s28 }
  0x10   :  { %s477_s29 = scalar_lea.vmem %s20_s26, 128  ;;  %p482_p6 = scmp.lt.s32.totalorder %s20_s26, %s20_s26 }
  0x11   :  { %p478_p5 = scmp.ne.s32.totalorder %s20_s26, %s477_s29  ;;  %p483_p7 = scmp.lt.s32.totalorder %s477_s29, %s477_s29 }
  0x13   :  { %p484_p8 = por %p483_p7, %p482_p6 }
  0x15   :  { %p485_p9 = pnand %p484_p8, %p478_p5 }
  0x17   :  { %488 = shalt.err (!%p485_p9)
}
  0x18   :  { %22 = dma.hbm_to_vmem [thread:$0]  %s617_s0, 128, %s20_s26, [#allocation6]  }
  0x19   :  { %s497_s7 = scalar_lea.vmem %s45_s28, 2048  ;;  %p502_p11 = scmp.lt.s32.totalorder %s45_s28, %s45_s28 }
  0x1a   :  { %p498_p10 = scmp.ne.s32.totalorder %s45_s28, %s497_s7  ;;  %p503_p12 = scmp.lt.s32.totalorder %s497_s7, %s497_s7 }
  0x1c   :  { %p504_p13 = por %p503_p12, %p502_p11 }
  0x1e   :  { %p505_p0 = pnand %p504_p13, %p498_p10 }
  0x20   :  { %508 = shalt.err (!%p505_p0)
}
  0x21   :  { %50 = dma.hbm_to_vmem [thread:$0]  %s621_s4, 2048, %s45_s28, [#allocation9], %s536_s21, %s536_s21, %s537_s22  }
  0x22   :  { %529 = dma.done.wait [#allocation6], 128  }
  0x23   :  { %530 = vsyncadd [#allocation6], 4294967168 }
  0x24   :  { %531 = dma.done.wait [#allocation9], 2304  }
  0x25   :  { %532 = vsyncadd [#allocation9], 4294964992  ;;  %v540_v0 = vmov 0.0   ;;  %vm541_vm0 = vmmov 0   ;;  %v71_v1 = vld [vmem:[#allocation8 + $0x8] sm:$0xff]  ;;  %v70_v2 = vld [vmem:[#allocation8] sm:$0xff] }
  0x26   :  { %397 = vmatprep.subr.mxu0 %v540_v0  ;;  %401 = vmatprep.mubr.msk.f32.mxu0 %vm541_vm0, %v540_v0  ;;  %v64_v3 = vld [vmem:[#allocation5] sm:$0xff]  ;;  %vm66_vm1 = vcmask 130048   ;;  %v186_v5 = vld [vmem:[#allocation10 + $0x78] sm:$0xff]  ;;  %v185_v7 = vld [vmem:[#allocation10 + $0x70] sm:$0xff]  ;;  %vm163_vm2 = vcmask 7168   ;;  %vm353_vm3 = vcmask 1040384  }
  0x27   :  { %404 = vmatprep.subr.mxu1 %v540_v0  ;;  %436 = vmatprep.mubr.msk.f32.mxu1 %vm541_vm0, %v540_v0  ;;  %v65_v4 = vmul.f32 %v64_v3, %v64_v3  ;;  %v184_v8 = vld [vmem:[#allocation10 + $0x68] sm:$0xff]  ;;  %v183_v9 = vld [vmem:[#allocation10 + $0x60] sm:$0xff]  ;;  %v182_v10 = vld [vmem:[#allocation10 + $0x58] sm:$0xff]  ;;  %165 = vst.msk [vmem:[#allocation4] sm:$0xff] %vm163_vm2, %v540_v0  ;;  %vm355_vm4 = vcmask 58368  }
  0x28   :  { %398 = vmatpush3.msra.mxu0 %v71_v1  ;;  %405 = vmatpush3.msra.mxu1 %v186_v5  ;;  %v181_v11 = vld [vmem:[#allocation10 + $0x50] sm:$0xff]  ;;  %v180_v12 = vld [vmem:[#allocation10 + $0x48] sm:$0xff]  ;;  %v179_v13 = vld [vmem:[#allocation10 + $0x40] sm:$0xff]  ;;  %164 = vst.msk [vmem:[#allocation3] sm:$0xff] %vm163_vm2, %v540_v0 }
  0x29   :  { %399 = vmatprep.subr.mxu0 %v540_v0  ;;  %v67_v6 = vsel %vm66_vm1, %v65_v4, 0.0  ;;  %406 = vmatprep.subr.mxu1 %v540_v0  ;;  %v178_v14 = vld [vmem:[#allocation10 + $0x38] sm:$0xff]  ;;  %v177_v15 = vld [vmem:[#allocation10 + $0x30] sm:$0xff]  ;;  %v176_v16 = vld [vmem:[#allocation10 + $0x28] sm:$0xff] }
  0x2a   :  { %400 = vmatpush3.msra.mxu0 %v70_v2  ;;  %68 = vadd.xlane.f32.xlu0 %v67_v6  ;;  %v175_v17 = vld [vmem:[#allocation10 + $0x20] sm:$0xff]  ;;  %v174_v18 = vld [vmem:[#allocation10 + $0x18] sm:$0xff]  ;;  %v173_v19 = vld [vmem:[#allocation10 + $0x10] sm:$0xff] }
  0x2b   :  { %402 = vmatmul.mubr.msk.f32.vlgmr.msra.gmra.mxu0 %vm66_vm1, %v64_v3  ;;  %407 = vmatpush3.msra.mxu1 %v185_v7  ;;  %v172_v20 = vld [vmem:[#allocation10 + $0x8] sm:$0xff]  ;;  %v171_v21 = vld [vmem:[#allocation10] sm:$0xff]  ;;  %v375_v22 = vld [vmem:[%s619_s2] ss:$0 sm:$0xff]  ;;  %s542_s2 = smov [#allocation11]  }
  0x2c   :  { %408 = vmatprep.subr.mxu1 %v540_v0  ;;  %v376_v34 = vld [vmem:[%s620_s3] ss:$0 sm:$0xff]  ;;  %s363_s3 = sshll.u32 %s542_s2, 4  ;;  %s364_s3 = int_to_ptr.vmem [resolvable:$true] %s363_s3 }
  0x2d   :  { %409 = vmatpush3.msra.mxu1 %v184_v8  ;;  %s509_s11 = scalar_lea.vmem %s364_s3, 32  ;;  %p514_p2 = scmp.lt.s32.totalorder %s364_s3, %s364_s3 }
  0x2e   :  { %410 = vmatprep.subr.mxu1 %v540_v0  ;;  %v265_v37 = vld [vmem:[#allocation4] sm:$0xff]  ;;  %p510_p1 = scmp.ne.s32.totalorder %s364_s3, %s509_s11  ;;  %p515_p3 = scmp.lt.s32.totalorder %s509_s11, %s509_s11 }
  0x2f   :  { %411 = vmatpush3.msra.mxu1 %v183_v9  ;;  %v257_v45 = vld [vmem:[#allocation3] sm:$0xff] }
  0x30   :  { %412 = vmatprep.subr.mxu1 %v540_v0  ;;  %p516_p4 = por %p515_p3, %p514_p2 }
  0x31   :  { %413 = vmatpush3.msra.mxu1 %v182_v10 }
  0x32   :  { %414 = vmatprep.subr.mxu1 %v540_v0  ;;  %p517_p5 = pnand %p516_p4, %p510_p1 }
  0x33   :  { %415 = vmatpush3.msra.mxu1 %v181_v11 }
  0x34   :  { %416 = vmatprep.subr.mxu1 %v540_v0 }
  0x35   :  { %417 = vmatpush3.msra.mxu1 %v180_v12 }
  0x36   :  { %418 = vmatprep.subr.mxu1 %v540_v0 }
  0x37   :  { %419 = vmatpush3.msra.mxu1 %v179_v13 }
  0x38   :  { %420 = vmatprep.subr.mxu1 %v540_v0 }
  0x39   :  { %421 = vmatpush3.msra.mxu1 %v178_v14 }
  0x3a   :  { %422 = vmatprep.subr.mxu1 %v540_v0 }
  0x3b   :  { %423 = vmatpush3.msra.mxu1 %v177_v15 }
  0x3c   :  { %424 = vmatprep.subr.mxu1 %v540_v0 }
  0x3d   :  { %425 = vmatpush3.msra.mxu1 %v176_v16 }
  0x3e   :  { %426 = vmatprep.subr.mxu1 %v540_v0 }
  0x3f   :  { %427 = vmatpush3.msra.mxu1 %v175_v17 }
  0x40   :  { %428 = vmatprep.subr.mxu1 %v540_v0 }
  0x41   :  { %429 = vmatpush3.msra.mxu1 %v174_v18 }
  0x42   :  { %430 = vmatprep.subr.mxu1 %v540_v0 }
  0x43   :  { %431 = vmatpush3.msra.mxu1 %v173_v19 }
  0x44   :  { %432 = vmatprep.subr.mxu1 %v540_v0 }
  0x45   :  { %433 = vmatpush3.msra.mxu1 %v172_v20 }
  0x46   :  { %434 = vmatprep.subr.mxu1 %v540_v0 }
  0x47   :  { %435 = vmatpush3.msra.mxu1 %v171_v21 }
  0xb3   :  { %v69_v23 = vpop.xlane.xlu0 %68 }
  0xb4   :  { %v152_v24 = vadd.f32 %v375_v22, %v69_v23 }
  0xeb   :  { %v141_v25 = vpop.f32.mrf.mxu0 }
  0xec   :  { %v153_v26 = vmul.f32 2.0, %v141_v25 }
  0xed   :  { %v403_v27 = vpop.f32.mrf.mxu0 }
  0xee   :  { %v154_v28 = vsub.f32 %v152_v24, %v153_v26 }
  0xf0   :  { %v155_v29 = vmax.f32 %v154_v28, 0.0 }
  0xf2   :  { %v156_v30 = vmul.f32 -0.5, %v155_v29 }
  0xf4   :  { %v158_v31 = vmul.f32 0.44444445, %v156_v30 }
  0xf6   :  { %v159_v32 = vmul.f32 1.442695, %v158_v31 }
  0xf8   :  { %447 = vpow2.f32 %v159_v32 }
 0x105   :  { %v448_v33 = vpop.eup %447 }
 0x106   :  { %v161_v35 = vmul.f32 2.0, %v448_v33 }
 0x108   :  { %437 = vmatmul.mubr.f32.vlgmr.msra.gmra.mxu1 %v161_v35  ;;  %v273_v36 = vmul.f32 %v376_v34, %v161_v35 }
 0x10a   :  { %274 = vadd.xlane.f32.xlu1 %v273_v36 }
 0x193   :  { %v275_v38 = vpop.xlane.xlu1 %274 }
 0x194   :  { %v276_v39 = vadd.f32 %v275_v38, %v265_v37 }
 0x196   :  { %277 = vst.msk [vmem:[#allocation4] sm:$0xff] %vm163_vm2, %v276_v39 }
 0x19d   :  { %v281_v43 = vld [vmem:[#allocation4] sm:$0xff] }
 0x19e   :  { %v282_v44 = vadd.f32 0.25, %v281_v43 }
 0x1c8   :  { %v253_v40 = vpop.f32.mrf.mxu1 }
 0x1c9   :  { %v259_v41 = vmul.f32 %v253_v40, %v161_v35 }
 0x1ca   :  { %v438_v42 = vpop.f32.mrf.mxu1 }
 0x1cb   :  { %260 = vadd.xlane.f32.xlu0 %v259_v41 }
 0x1f8   :  { %286 = vxpose.xlu0.b32.start.end [1/1] (short) (narrow) %v282_v44, 8 }
 0x254   :  { %v261_v46 = vpop.xlane.xlu0 %260 }
 0x255   :  { %v262_v47 = vadd.f32 %v261_v46, %v257_v45 }
 0x257   :  { %264 = vst.msk [vmem:[#allocation3] sm:$0xff] %vm163_vm2, %v262_v47 }
 0x25e   :  { %v283_v48 = vld [vmem:[#allocation3] sm:$0xff] }
 0x25f   :  { %v284_v49 = vsub.f32 2.0, %v283_v48 }
 0x261   :  { %v285_v50 = vmax.f32 %v284_v49, 1e-10 }
 0x263   :  { %318 = vxpose.xlu1.b32.start.end [1/1] (short) (narrow) %v285_v50, 8 }
 0x274   :  { %v302_v52 = vpop.trf.xlu0 }
 0x2df   :  { %v334_v51 = vpop.trf.xlu1 }
 0x2e0   :  { %v351_v53 = vrot.slane %v334_v51, 7 }
 0x2e2   :  { %v354_v54 = vsel %vm353_vm3, %v302_v52, %v351_v53 }
 0x2e3   :  { %356 = vst.msk [vmem:[#allocation11] sm:$0x3] %vm355_vm4, %v354_v54 }
 0x2e4   :  { %520 = shalt.err (!%p517_p5)
}
 0x2e5   :  { %366 = dma.vmem_to_hbm [thread:$0]  %s364_s3, 32, %s622_s5, [#allocation7]  }
 0x2e6   :  { %533 = dma.done.wait [#allocation7], 32  }
 0x2e7   :  { %534 = vsyncadd [#allocation7], 4294967264 }
 0x2e8   :  { %370 = vsyncpa [#allocation6], 1 }
 0x2e9   :  { %371 = vsyncpa [#allocation9], 1 }
 0x2ea   :  { %372 = vsyncpa [#allocation7], 1 }

</bundles_post_ra>
